<compile_context>
chip_gen: v6e
topology: v6e:2x2x1
jax: 0.10.0
libtpu: 0.0.40
codegen_flags: <defaults>
</compile_context>

<pallas_src>
import jax
import jax.numpy as jnp
from jax.experimental import pallas as pl
from jax.experimental.pallas import tpu as pltpu


def _comp_att_kernel_fused(w_ref, b_ref, *refs):
    # w_ref: (1, C) VMEM   b_ref: (1,) SMEM
    # refs = (x_0, ..., x_{P-1}, out) with x_p: (1, D, TS), out: (1, 1, TS)
    *x_refs, o_ref = refs
    x = jnp.concatenate([r[0] for r in x_refs], axis=0)                # (C, TS)
    acc = jnp.dot(w_ref[...], x, preferred_element_type=jnp.float32)   # (1, TS) f32
    o_ref[0] = jax.nn.sigmoid(acc + b_ref[0]).astype(o_ref.dtype)


def _comp_att_kernel_perpart(w_ref, b_ref, *refs):
    # Fallback when hidden_dim is not sublane-aligned for the in-kernel concat.
    # w_ref: (P, D) VMEM   b_ref: (1,) SMEM
    *x_refs, o_ref = refs
    ts = o_ref.shape[-1]
    acc = jnp.full((1, ts), b_ref[0], dtype=jnp.float32)
    for p, x_ref in enumerate(x_refs):
        acc = acc + jnp.dot(w_ref[p:p + 1, :], x_ref[0],
                            preferred_element_type=jnp.float32)
    o_ref[0] = jax.nn.sigmoid(acc).astype(o_ref.dtype)


def _tpu_vmem_capacity_bytes(default=64 * 1024 * 1024):
    """Physical VMEM of the current chip (conservative 64 MiB fallback)."""
    try:
        cap = int(getattr(pltpu.get_tpu_info(), "vmem_capacity_bytes", 0))
        return cap if cap > 0 else default
    except Exception:
        return default


def _pick_spatial_tile(S, C, N, dtype_bytes, vmem_cap):
    """Largest lane-aligned spatial tile fitting ~half of physical VMEM
    (double-buffered inputs), capped at one full lane-padded row and at a
    tile size that still leaves >= 2 parallel grid blocks (v7x megacore)."""
    input_budget = vmem_cap // 2                      # double-buffered child blocks
    ts = input_budget // (2 * C * dtype_bytes)
    ts = max(128, (ts // 128) * 128)
    s_pad = max(128, ((S + 127) // 128) * 128)        # never larger than one row
    ts = min(ts, s_pad)
    while ts > 128 and N * pl.cdiv(S, ts) < 2:        # keep both TensorCores busy
        ts = max(128, ((ts // 2) // 128) * 128)
    return ts


def _vmem_limit_bytes(ts, C, in_bytes, out_bytes, vmem_cap, fused):
    """vmem_limit derived from the chosen tile, clamped to ~90% of physical."""
    child_blocks = 2 * C * ts * in_bytes              # double-buffered inputs
    concat_buf = (C * ts * in_bytes) if fused else 0  # in-kernel (C, TS) tile
    out_blocks = 2 * ts * out_bytes                   # double-buffered output
    epilogue = 4 * ts * 4                             # f32 acc / sigmoid temps
    fixed = C * 4 + (2 << 20)                         # weight + compiler scratch
    need = child_blocks + concat_buf + out_blocks + epilogue + fixed
    limit = max(int(need * 1.2), 32 * 1024 * 1024)
    return min(limit, int(vmem_cap * 0.9))


def comp_att_forward(child_list, weight, bias):
    """Forward pass of Comp_att.

    child_list: list of arrays, each [N, hidden_dim, H, W] (NCHW)
    weight:     [1, C_in, 1, 1]  (Conv2d weight, C_in = parts_num*hidden_dim)
    bias:       [1]
    returns:    [N, 1, H, W] in the children's dtype
    """
    P = len(child_list)
    N, D, H, W = child_list[0].shape
    for c in child_list:
        assert c.shape == (N, D, H, W), "all parts must share [N, hidden_dim, H, W]"
    S = H * W
    C = P * D
    assert weight.size == C, "Conv2d weight must have parts_num*hidden_dim input channels"

    cdt = jnp.result_type(*[c.dtype for c in child_list])
    in_bytes = jnp.dtype(cdt).itemsize
    out_dtype = cdt
    out_bytes = jnp.dtype(out_dtype).itemsize

    # Native-dtype free reshapes: [N, D, H, W] -> [N, D, S] (no up-cast pass).
    x_parts = [jnp.reshape(c if c.dtype == cdt else c.astype(cdt), (N, D, S))
               for c in child_list]
    b1d = bias.reshape(1).astype(jnp.float32)          # scalar bias in SMEM

    # The fused single-K=C matmul needs part boundaries on sublane multiples.
    sublane = 8 * max(1, 4 // in_bytes)
    fused = (D % sublane == 0)
    if fused:
        kernel = _comp_att_kernel_fused
        w2d = weight.reshape(1, C).astype(cdt)
        w_spec = pl.BlockSpec((1, C), lambda n, s: (0, 0))
    else:
        kernel = _comp_att_kernel_perpart
        w2d = weight.reshape(P, D).astype(cdt)
        w_spec = pl.BlockSpec((P, D), lambda n, s: (0, 0))

    vmem_cap = _tpu_vmem_capacity_bytes()
    ts = _pick_spatial_tile(S, C, N, in_bytes, vmem_cap)
    grid = (N, pl.cdiv(S, ts))

    in_specs = [
        w_spec,                                              # weight, VMEM-resident
        pl.BlockSpec(memory_space=pltpu.MemorySpace.SMEM),   # scalar bias
    ] + [
        pl.BlockSpec((1, D, ts), lambda n, s: (n, 0, s))     # NCHW-native child block
        for _ in range(P)
    ]
    out_spec = pl.BlockSpec((1, 1, ts), lambda n, s: (n, 0, s))

    y = pl.pallas_call(
        kernel,
        out_shape=jax.ShapeDtypeStruct((N, 1, S), out_dtype),
        grid_spec=pltpu.PrefetchScalarGridSpec(
            num_scalar_prefetch=0,
            grid=grid,
            in_specs=in_specs,
            out_specs=out_spec,
        ),
        compiler_params=pltpu.CompilerParams(
            dimension_semantics=("parallel", "parallel"),
            vmem_limit_bytes=_vmem_limit_bytes(ts, C, in_bytes, out_bytes,
                                               vmem_cap, fused),
        ),
        cost_estimate=pl.CostEstimate(
            flops=2 * N * S * C,
            transcendentals=2 * N * S,
            bytes_accessed=in_bytes * N * S * C + out_bytes * N * S + 4 * (C + 1),
        ),
    )(w2d, b1d, *x_parts)

    # [N, 1, S] -> [N, 1, H, W]  (free reshape, already NCHW order).
    return y.reshape(N, 1, H, W)


def comp_att_reference(child_list, weight, bias):
    """Pure-JAX reference (for correctness check)."""
    x = jnp.concatenate([c.astype(jnp.float32) for c in child_list], axis=1)
    w = weight.reshape(-1).astype(jnp.float32)
    y = jnp.einsum("nchw,c->nhw", x, w) + bias.astype(jnp.float32)[0]
    return jax.nn.sigmoid(y)[:, None, :, :]


if __name__ == "__main__":
    key = jax.random.PRNGKey(0)

    # Small but representative shapes: parts_num * hidden_dim = 4 * 32 = 128
    N, hidden_dim, parts_num, H, W = 2, 32, 4, 16, 16
    C_in = parts_num * hidden_dim

    keys = jax.random.split(key, parts_num + 2)
    child_list = [
        jax.random.normal(keys[i], (N, hidden_dim, H, W), dtype=jnp.float32)
        for i in range(parts_num)
    ]
    # Deterministic "init" of Conv2d(C_in, 1, kernel_size=1, bias=True) params.
    bound = 1.0 / float(C_in) ** 0.5
    weight = jax.random.uniform(
        keys[parts_num], (1, C_in, 1, 1), minval=-bound, maxval=bound,
        dtype=jnp.float32)
    bias = jax.random.uniform(
        keys[parts_num + 1], (1,), minval=-bound, maxval=bound,
        dtype=jnp.float32)

    # f32 path: strict correctness check against the pure-JAX reference.
    out = jax.block_until_ready(comp_att_forward(child_list, weight, bias))
    ref = comp_att_reference(child_list, weight, bias)
    assert out.shape == (N, 1, H, W), out.shape
    assert jnp.allclose(out, ref, atol=1e-5, rtol=1e-5), (
        float(jnp.max(jnp.abs(out - ref))))

    # bf16 path: native-dtype (no wrapper up-cast), loose tolerance smoke test.
    child_bf16 = [c.astype(jnp.bfloat16) for c in child_list]
    out_bf16 = jax.block_until_ready(comp_att_forward(child_bf16, weight, bias))
    assert out_bf16.shape == (N, 1, H, W) and out_bf16.dtype == jnp.bfloat16
    assert float(jnp.max(jnp.abs(out_bf16.astype(jnp.float32) - ref))) < 5e-2

    print("KERNEL_OK")
</pallas_src>

<mosaic_0001>
module attributes {stable_mosaic.version = 11 : i64} {
  func.func @_comp_att_kernel_fused(%arg0: i32, %arg1: i32, %arg2: memref<1x128xf32, #tpu.memory_space<vmem>>, %arg3: memref<1xf32, #tpu.memory_space<smem>>, %arg4: memref<1x32x256xf32, #tpu.memory_space<vmem>>, %arg5: memref<1x32x256xf32, #tpu.memory_space<vmem>>, %arg6: memref<1x32x256xf32, #tpu.memory_space<vmem>>, %arg7: memref<1x32x256xf32, #tpu.memory_space<vmem>>, %arg8: memref<1x1x256xf32, #tpu.memory_space<vmem>>) attributes {dimension_semantics = [#tpu.dimension_semantics<parallel>, #tpu.dimension_semantics<parallel>], iteration_bounds = array<i64: 2, 1>, scalar_prefetch = 0 : i64, scratch_operands = 0 : i64, tpu.core_type = #tpu.core_type<tc>, window_params = [{pipeline_mode = #tpu.pipeline_mode<synchronous>, transform_indices = @transform_0, window_bounds = array<i64: 1, 128>}, {transform_indices = @transform_1, window_bounds = array<i64: 1>}, {transform_indices = @transform_2, window_bounds = array<i64: 1, 32, 256>}, {transform_indices = @transform_3, window_bounds = array<i64: 1, 32, 256>}, {transform_indices = @transform_4, window_bounds = array<i64: 1, 32, 256>}, {transform_indices = @transform_5, window_bounds = array<i64: 1, 32, 256>}, {transform_indices = @transform_6, window_bounds = array<i64: 1, 1, 256>}]} {
    %c0 = arith.constant 0 : index
    %c0_0 = arith.constant 0 : index
    %c0_1 = arith.constant 0 : index
    %0 = vector.load %arg4[%c0, %c0_0, %c0_1] : memref<1x32x256xf32, #tpu.memory_space<vmem>>, vector<1x32x256xf32>
    %1 = vector.shape_cast %0 : vector<1x32x256xf32> to vector<32x256xf32>
    %c0_2 = arith.constant 0 : index
    %c0_3 = arith.constant 0 : index
    %c0_4 = arith.constant 0 : index
    %2 = vector.load %arg5[%c0_2, %c0_3, %c0_4] : memref<1x32x256xf32, #tpu.memory_space<vmem>>, vector<1x32x256xf32>
    %3 = vector.shape_cast %2 : vector<1x32x256xf32> to vector<32x256xf32>
    %c0_5 = arith.constant 0 : index
    %c0_6 = arith.constant 0 : index
    %c0_7 = arith.constant 0 : index
    %4 = vector.load %arg6[%c0_5, %c0_6, %c0_7] : memref<1x32x256xf32, #tpu.memory_space<vmem>>, vector<1x32x256xf32>
    %5 = vector.shape_cast %4 : vector<1x32x256xf32> to vector<32x256xf32>
    %c0_8 = arith.constant 0 : index
    %c0_9 = arith.constant 0 : index
    %c0_10 = arith.constant 0 : index
    %6 = vector.load %arg7[%c0_8, %c0_9, %c0_10] : memref<1x32x256xf32, #tpu.memory_space<vmem>>, vector<1x32x256xf32>
    %7 = vector.shape_cast %6 : vector<1x32x256xf32> to vector<32x256xf32>
    %8 = tpu.concatenate %1, %3, %5, %7 in 0 : vector<32x256xf32>, vector<32x256xf32>, vector<32x256xf32>, vector<32x256xf32> -> vector<128x256xf32>
    %c0_11 = arith.constant 0 : index
    %c0_12 = arith.constant 0 : index
    %9 = vector.load %arg2[%c0_11, %c0_12] : memref<1x128xf32, #tpu.memory_space<vmem>>, vector<1x128xf32>
    %cst = arith.constant dense<0.000000e+00> : vector<1x256xf32>
    %10 = tpu.matmul %9, %8, %cst {dimension_numbers = #tpu.dot_dimension_numbers<[1], [0], [0], [1], [0, 0, 1, 1], [], []>} : vector<1x128xf32>, vector<128x256xf32>, vector<1x256xf32> -> vector<1x256xf32>
    %c0_13 = arith.constant 0 : index
    %11 = memref.load %arg3[%c0_13] : memref<1xf32, #tpu.memory_space<smem>>
    %12 = vector.broadcast %11 : f32 to vector<1x256xf32>
    %13 = arith.addf %10, %12 : vector<1x256xf32>
    %14 = arith.negf %13 : vector<1x256xf32>
    %15 = math.exp %14 : vector<1x256xf32>
    %cst_14 = arith.constant 1.000000e+00 : f32
    %16 = vector.broadcast %cst_14 : f32 to vector<1x256xf32>
    %17 = arith.addf %16, %15 : vector<1x256xf32>
    %18 = arith.divf %16, %17 : vector<1x256xf32>
    %c0_15 = arith.constant 0 : index
    %c0_16 = arith.constant 0 : index
    %c0_17 = arith.constant 0 : index
    %19 = vector.load %arg8[%c0_15, %c0_16, %c0_17] : memref<1x1x256xf32, #tpu.memory_space<vmem>>, vector<1x1x256xf32>
    %20 = vector.shape_cast %19 : vector<1x1x256xf32> to vector<1x256xf32>
    %21 = vector.shape_cast %18 : vector<1x256xf32> to vector<1x1x256xf32>
    tpu.vector_store %arg8[%c0_15, %c0_16, %c0_17], %21 {strides = array<i32>} : memref<1x1x256xf32, #tpu.memory_space<vmem>>, vector<1x1x256xf32>,
    return
  }
  func.func @transform_0(%arg0: i32, %arg1: i32) -> (i32, i32) {
    %c0_i32 = arith.constant 0 : i32
    %c0_i32_0 = arith.constant 0 : i32
    %c0_i32_1 = arith.constant 0 : i32
    return %c0_i32, %c0_i32_0 : i32, i32
  }
  func.func @transform_1(%arg0: i32, %arg1: i32) -> i32 {
    %c0_i32 = arith.constant 0 : i32
    %c0_i32_0 = arith.constant 0 : i32
    return %c0_i32 : i32
  }
  func.func @transform_2(%arg0: i32, %arg1: i32) -> (i32, i32, i32) {
    %c0_i32 = arith.constant 0 : i32
    %c0_i32_0 = arith.constant 0 : i32
    return %arg0, %c0_i32, %arg1 : i32, i32, i32
  }
  func.func @transform_3(%arg0: i32, %arg1: i32) -> (i32, i32, i32) {
    %c0_i32 = arith.constant 0 : i32
    %c0_i32_0 = arith.constant 0 : i32
    return %arg0, %c0_i32, %arg1 : i32, i32, i32
  }
  func.func @transform_4(%arg0: i32, %arg1: i32) -> (i32, i32, i32) {
    %c0_i32 = arith.constant 0 : i32
    %c0_i32_0 = arith.constant 0 : i32
    return %arg0, %c0_i32, %arg1 : i32, i32, i32
  }
  func.func @transform_5(%arg0: i32, %arg1: i32) -> (i32, i32, i32) {
    %c0_i32 = arith.constant 0 : i32
    %c0_i32_0 = arith.constant 0 : i32
    return %arg0, %c0_i32, %arg1 : i32, i32, i32
  }
  func.func @transform_6(%arg0: i32, %arg1: i32) -> (i32, i32, i32) {
    %c0_i32 = arith.constant 0 : i32
    %c0_i32_0 = arith.constant 0 : i32
    return %arg0, %c0_i32, %arg1 : i32, i32, i32
  }
}

</mosaic_0001>

<bundles_post_ra>
// kernel: tpu_custom_call.1
= control target key start
LH: loop header
LB: loop body
LE: loop exit
PB: predicated region body
PF: predicated region fallthrough
CT: control target
= control target key end

     0   :  { %s1366_s0 = inlined_call_operand.vmem [shape: f32[1,128], index: 0, kind: input, shape index: {}]   ;;  %s1367_s1 = inlined_call_operand.<no memory space> [shape: f32[1], index: 1, kind: input, shape index: {}]   ;;  %s1368_s2 = inlined_call_operand.hbm [shape: f32[2,32,256], index: 2, kind: input, shape index: {}]   ;;  %s1369_s3 = inlined_call_operand.hbm [shape: f32[2,32,256], index: 3, kind: input, shape index: {}]   ;;  %s1370_s4 = inlined_call_operand.hbm [shape: f32[2,32,256], index: 4, kind: input, shape index: {}]   ;;  %s1371_s5 = inlined_call_operand.hbm [shape: f32[2,32,256], index: 5, kind: input, shape index: {}]   ;;  %s1372_s6 = inlined_call_operand.hbm [shape: f32[2,1,256], index: 6, kind: output, shape index: {}]  }
   0x1   :  { %1380 = sst [smem:[#allocation22_spill]] %s1369_s3 }
   0x2   :  { %11 = sst [smem:[#allocation2]] %s1367_s1 }
   0x3   :  { %12 = vsyncpa [#allocation4], 0 }
   0x4   :  { %14 = vsyncpa [#allocation4 + $0x1], 0 }
   0x5   :  { %15 = vsyncpa [#allocation7], 0 }
   0x6   :  { %17 = vsyncpa [#allocation7 + $0x1], 0 }
   0x7   :  { %18 = vsyncpa [#allocation10], 0 }
   0x8   :  { %20 = vsyncpa [#allocation10 + $0x1], 0 }
   0x9   :  { %21 = vsyncpa [#allocation5], 0 }
   0xa   :  { %23 = vsyncpa [#allocation5 + $0x1], 0  ;;  %s1112_s23 = smov 0   ;;  %s1114_s24 = smov 0  }
   0xb   :  { %s1116_s25 = smov 0   ;;  %s1118_s26 = smov 0  }
   0xc   :  { %s1120_s27 = smov 0   ;;  %s1122_s28 = smov 0  }
   0xd LB: > { %1381 = sst [smem:[#allocation16_spill]] %s1043_s23  ;;  %s1143_s1 = sadd.s32 4294967295, %s1063_s28   ;;  %s1063_s28 = sphi %s1122_s28, %s29_s28   ;;  %s1059_s27 = sphi %s1120_s27, %s1401_s27   ;;  %s1055_s26 = sphi %s1118_s26, %s1400_s26   ;;  %s1051_s25 = sphi %s1116_s25, %s1399_s25   ;;  %s1047_s24 = sphi %s1114_s24, %s1403_s24   ;;  %s1043_s23 = sphi %s1112_s23, %s1402_s23  }
   0xe   : > { %1382 = sst [smem:[#allocation17_spill]] %s1051_s25  ;;  %s741_s29 = sadd.s32 4294967294, %s1063_s28  }
   0xf   : > { %1383 = sst [smem:[#allocation18_spill]] %s1059_s27  ;;  %s41_s30 = sadd.s32 1, %s1059_s27 }
  0x10   : > { %s92_s7 = sadd.s32 1, %s1051_s25  ;;  %p43_p0 = scmp.ge.s32.totalorder %s41_s30, 2 }
  0x11   : > { %p99_p1 = scmp.ne.s32.totalorder %s1051_s25, %s1047_s24  ;;  %p100_p2 = scmp.eq.s32.totalorder %s1063_s28, 0 }
  0x12   : > { %p105_p3 = scmp.ne.s32.totalorder %s1047_s24, %s1043_s23  ;;  %s1405_s30 = smov (%p43_p0, %s41_s30), 0 }
  0x13   : > { %1384 = sst [smem:[#allocation19_spill]] %s1405_s30  ;;  %p1155_p4 = por %p100_p2, %p99_p1 }
  0x14   : > { %p106_p5 = scmp.eq.s32.totalorder %s1143_s1, 0  ;;  %s87_s9 = ssub.s32 %s1059_s27, %s1405_s30 }
  0x15   : > { %p215_p6 = scmp.eq.s32.totalorder %s1143_s1, 1  ;;  %p90_p7 = scmp.eq.s32.totalorder %s87_s9, 0 }
  0x16   : > { %p1163_p8 = por %p106_p5, %p105_p3  ;;  %p221_p10 = scmp.eq.s32.totalorder %s741_s29, 1 }
  0x17   : > { %p1167_p9 = por %p215_p6, %p99_p1  ;;  %p801_p13 = scmp.lt.s32.totalorder %s1063_s28, 2 }
  0x18   : > { %s1172_s12 = scalar_select %p90_p7, %s1051_s25, %s92_s7  }
  0x19   : > { %p1174_p11 = por %p221_p10, %p105_p3  ;;  %s1181_s14 = sand.u32 1, %s1051_s25  }
  0x1a   : > { %1388 = sst [smem:[#allocation20_spill]] %s1172_s12  ;;  %s1184_s15 = sshll.u32 %s1181_s14, 6 }
  0x1b   : > { %s1389_s13 = scalar_select %p1174_p11, 1, 0 }
  0x1c   : > { %s1187_s16 = sshll.u32 %s1059_s27, 10  ;;  %p1191_p0 = pnand %p801_p13, %p1155_p4 }
  0x1d   : > { %1390 = sst [smem:[#allocation21_spill]] %s1389_s13  ;;  %s270_s18 = sand.u32 1, %s1063_s28  }
  0x1e   : > { %s1392_s3 = sld [smem:[#allocation22_spill]]  ;;  %s274_s22 = scalar_lea.vmem [#allocation6], %s1184_s15 }
  0x1f   : > { %s283_s29 = sshll.u32 %s274_s22, 4  ;;  %p756_p1 = scmp.ge.s32.totalorder %s1063_s28, 1  ;;  %s284_s29 = int_to_ptr.vmem [resolvable:$true] %s283_s29 }
  0x20   : > { %p337_p2 = scmp.lt.s32.totalorder %s1063_s28, 3  ;;  %s1203_s7 = scalar_lea.sflag [#allocation7], %s270_s18 }
  0x21   : > { %p865_p3 = pneg %p1191_p0  ;;  %s876_s8 = scalar_lea.vmem %s284_s29, 1024 }
  0x22   : > { %p877_p4 = scmp.ne.s32.totalorder %s284_s29, %s876_s8  ;;  %s1065_s9 = smov [#allocation6]  }
  0x23   : > { %s881_s30 = sshll.u32 %s1065_s9, 4  ;;  %s882_s30 = int_to_ptr.vmem [resolvable:$false] %s881_s30 }
  0x24   : > { %s282_s21 = scalar_lea.hbm %s1392_s3, %s1187_s16  ;;  %p879_p5 = pnand %p877_p4, %p865_p3 }
  0x25   : > { %s883_s19 = scalar_lea.vmem %s882_s30, 2048  ;;  %p884_p7 = scmp.lt.s32.totalorder %s284_s29, %s882_s30 }
  0x26   : > { %p880_p6 = pneg %p879_p5  ;;  %p885_p10 = scmp.lt.s32.totalorder %s883_s19, %s876_s8 }
  0x28   : > { %p886_p13 = por %p885_p10, %p884_p7 }
  0x2a   : > { %p887_p12 = pnand %p886_p13, %p880_p6 }
  0x2c   : > { %890 = shalt.err (!%p887_p12)
}
  0x2d   : > { %s1378_s20 = smov 256   ;;  %s1067_s18 = smov 16  }
  0x2e   : > { %790 = dma.hbm_to_vmem [thread:$0]  (!%p1191_p0), %s282_s21, 1024, %s284_s29, %s1203_s7, %s1378_s20, %s1378_s20, %s1067_s18  }
  0x2f   : > { %p1220_p4 = pnand %p756_p1, %p337_p2  ;;  %s259_s9 = scalar_lea.hbm %s1368_s2, %s1187_s16 }
  0x30   : > { %s251_s19 = scalar_lea.vmem [#allocation3], %s1184_s15  ;;  %s305_s25 = scalar_lea.hbm %s1370_s4, %s1187_s16 }
  0x31   : > { %s260_s3 = sshll.u32 %s251_s19, 4  ;;  %s248_s13 = scalar_lea.sflag [#allocation4], %s1181_s14  ;;  %s261_s3 = int_to_ptr.vmem [resolvable:$true] %s260_s3 }
  0x32   : > { %s904_s23 = scalar_lea.vmem %s261_s3, 1024  ;;  %s1068_s21 = smov [#allocation3]  }
  0x33   : > { %p905_p12 = scmp.ne.s32.totalorder %s261_s3, %s904_s23  ;;  %s909_s29 = sshll.u32 %s1068_s21, 4  ;;  %s910_s29 = int_to_ptr.vmem [resolvable:$false] %s909_s29 }
  0x34   : > { %s911_s20 = scalar_lea.vmem %s910_s29, 2048  ;;  %p912_p5 = scmp.lt.s32.totalorder %s261_s3, %s910_s29 }
  0x35   : > { %p907_p1 = pnand %p905_p12, %p865_p3  ;;  %p913_p6 = scmp.lt.s32.totalorder %s911_s20, %s904_s23 }
  0x37   : > { %p908_p2 = pneg %p907_p1  ;;  %p914_p7 = por %p913_p6, %p912_p5 }
  0x39   : > { %p915_p10 = pnand %p914_p7, %p908_p2 }
  0x3b   : > { %918 = shalt.err (!%p915_p10)
}
  0x3c   : > { %s1394_s27 = smov 256   ;;  %s297_s12 = scalar_lea.vmem [#allocation8], %s1184_s15 }
  0x3d   : > { %787 = dma.hbm_to_vmem [thread:$0]  (!%p1191_p0), %s259_s9, 1024, %s261_s3, %s248_s13, %s1394_s27, %s1394_s27, %s1067_s18  }
  0x3e   : > { %s306_s22 = sshll.u32 %s297_s12, 4  ;;  %s1069_s23 = smov [#allocation8]   ;;  %s307_s22 = int_to_ptr.vmem [resolvable:$true] %s306_s22 }
  0x3f   : > { %s932_s8 = scalar_lea.vmem %s307_s22, 1024  ;;  %s937_s20 = sshll.u32 %s1069_s23, 4  ;;  %s938_s20 = int_to_ptr.vmem [resolvable:$false] %s937_s20 }
  0x40   : > { %p933_p13 = scmp.ne.s32.totalorder %s307_s22, %s932_s8  ;;  %s939_s19 = scalar_lea.vmem %s938_s20, 2048 }
  0x41   : > { %p940_p2 = scmp.lt.s32.totalorder %s307_s22, %s938_s20  ;;  %p941_p5 = scmp.lt.s32.totalorder %s939_s19, %s932_s8 }
  0x42   : > { %p935_p12 = pnand %p933_p13, %p865_p3 }
  0x43   : > { %p942_p6 = por %p941_p5, %p940_p2 }
  0x44   : > { %p936_p1 = pneg %p935_p12 }
  0x46   : > { %p943_p7 = pnand %p942_p6, %p936_p1 }
  0x48   : > { %946 = shalt.err (!%p943_p7)
}
  0x49   : > { %793 = dma.hbm_to_vmem [thread:$0]  (!%p1191_p0), %s305_s25, 1024, %s307_s22, %s1203_s7, %s1394_s27, %s1394_s27, %s1067_s18  }
  0x4a   : > { %s328_s29 = scalar_lea.hbm %s1371_s5, %s1187_s16  ;;  %s320_s12 = scalar_lea.vmem [#allocation9], %s1184_s15 }
  0x4b   : > { %s329_s8 = sshll.u32 %s320_s12, 4  ;;  %s317_s23 = scalar_lea.sflag [#allocation10], %s1181_s14  ;;  %s330_s8 = int_to_ptr.vmem [resolvable:$true] %s329_s8 }
  0x4c   : > { %s960_s20 = scalar_lea.vmem %s330_s8, 1024  ;;  %s1070_s19 = smov [#allocation9]  }
  0x4d   : > { %p961_p10 = scmp.ne.s32.totalorder %s330_s8, %s960_s20  ;;  %s965_s3 = sshll.u32 %s1070_s19, 4  ;;  %s966_s3 = int_to_ptr.vmem [resolvable:$false] %s965_s3 }
  0x4e   : > { %s967_s13 = scalar_lea.vmem %s966_s3, 2048  ;;  %p968_p1 = scmp.lt.s32.totalorder %s330_s8, %s966_s3 }
  0x4f   : > { %p963_p13 = pnand %p961_p10, %p865_p3  ;;  %p969_p2 = scmp.lt.s32.totalorder %s967_s13, %s960_s20 }
  0x51   : > { %p964_p12 = pneg %p963_p13  ;;  %p970_p5 = por %p969_p2, %p968_p1 }
  0x53   : > { %p971_p6 = pnand %p970_p5, %p964_p12 }
  0x55   : > { %974 = shalt.err (!%p971_p6)
}
  0x56   : > { %796 = dma.hbm_to_vmem [thread:$0]  (!%p1191_p0), %s328_s29, 1024, %s330_s8, %s317_s23, %s1394_s27, %s1394_s27, %s1067_s18  }
  0x57   : > { %341 = sbr.rel (%p1220_p4) target bundleno = 380 (0x17c), region = 44  ;;  %s1274_s25 = sand.u32 (!%p1220_p4), 1, %s1047_s24  }
  0x58   : > { %s757_s14 = sshll.u32 (!%p1220_p4), %s1274_s25, 6  ;;  %s344_s15 = scalar_lea.sflag (!%p1220_p4), [#allocation4], %s1274_s25 }
  0x59   : > { %s1278_s16 = scalar_lea.vmem (!%p1220_p4), [#allocation3], %s757_s14 }
  0x5c   : > { %1026 = dma.done.wait (%p1163_p8), %s344_s15, 1024  }
  0x5d   : > { %1028 = vsyncadd (%p1163_p8), %s344_s15, 4294966272  ;;  %s352_s17 = sand.u32 1, %s1143_s1   ;;  %s1285_s18 = scalar_lea.vmem [#allocation6], %s757_s14 }
  0x5e   : > { %s353_s7 = scalar_lea.sflag [#allocation7], %s352_s17 }
  0x5f   : > { %1030 = dma.done.wait (%p1163_p8), %s353_s7, 2048  }
  0x60   : > { %1032 = vsyncadd (%p1163_p8), %s353_s7, 4294965248  ;;  %s1291_s30 = scalar_lea.vmem [#allocation8], %s757_s14  ;;  %s371_s27 = scalar_lea.sflag [#allocation10], %s1274_s25 }
  0x61   : > { %s374_s22 = scalar_lea.vmem [#allocation9], %s757_s14 }
  0x62   : > { %1034 = dma.done.wait (%p1163_p8), %s371_s27, 1024  }
  0x63   : > { %1036 = vsyncadd (%p1163_p8), %s371_s27, 4294966272  ;;  %v1071_v0 = vmov 0.0   ;;  %v454_v1 = vld [vmem:[%s374_s22 + $0x38] sm:$0xff]  ;;  %v453_v2 = vld [vmem:[%s374_s22 + $0x30] sm:$0xff]  ;;  %s456_s9 = sld [smem:[#allocation2]]  ;;  %v547_v47 = vlaneseq  ;;  %s761_s21 = sshll.u32 %s1274_s25, 1 }
  0x64   : > { %522 = vmatprep.mubr.f32.mxu0 %v1071_v0  ;;  %v452_v3 = vld [vmem:[%s374_s22 + $0x28] sm:$0xff]  ;;  %458 = vmatprep.subr.mxu0 %v454_v1  ;;  %v451_v4 = vld [vmem:[%s374_s22 + $0x20] sm:$0xff]  ;;  %v450_v5 = vld [vmem:[%s374_s22 + $0x18] sm:$0xff]  ;;  %v1072_v45 = vmov 1966171168   ;;  %s773_s29 = sshll.u32 %s1055_s26, 5 }
  0x65   : > { %459 = vmatpush1.msra.mxu0 %v453_v2  ;;  %v449_v6 = vld [vmem:[%s374_s22 + $0x10] sm:$0xff]  ;;  %v448_v7 = vld [vmem:[%s374_s22 + $0x8] sm:$0xff]  ;;  %v447_v8 = vld [vmem:[%s374_s22] sm:$0xff]  ;;  %v545_v46 = vunpack.c.l.s4 %v1072_v45  ;;  %v548_v49 = vshrl.u32 %v547_v47, 7  ;;  %s417_s12 = scalar_lea.vmem [#allocation11], %s761_s21  ;;  %vm561_vm0 = vcmp.lt.s32.totalorder %v547_v47, 256  ;;  %s579_s19 = scalar_lea.hbm %s1372_s6, %s773_s29 }
  0x66   : > { %460 = vmatprep.subr.mxu0 %v452_v3  ;;  %v446_v9 = vld [vmem:[%s1291_s30 + $0x38] sm:$0xff]  ;;  %v445_v10 = vld [vmem:[%s1291_s30 + $0x30] sm:$0xff]  ;;  %v444_v11 = vld [vmem:[%s1291_s30 + $0x28] sm:$0xff]  ;;  %s581_s8 = sshll.u32 %s417_s12, 4  ;;  %s565_s3 = scalar_lea.sflag [#allocation5], %s1274_s25  ;;  %s582_s8 = int_to_ptr.vmem [resolvable:$true] %s581_s8 }
  0x67   : > { %461 = vmatpush1.msra.mxu0 %v451_v4  ;;  %v443_v12 = vld [vmem:[%s1291_s30 + $0x20] sm:$0xff]  ;;  %v442_v13 = vld [vmem:[%s1291_s30 + $0x18] sm:$0xff]  ;;  %v441_v14 = vld [vmem:[%s1291_s30 + $0x10] sm:$0xff]  ;;  %v546_v48 = vunpack.c.0.s8 %v545_v46  ;;  %s975_s13 = scalar_lea.vmem %s582_s8, 32  ;;  %s1073_s14 = smov [#allocation11]  }
  0x68   : > { %462 = vmatprep.subr.mxu0 %v450_v5  ;;  %v440_v15 = vld [vmem:[%s1291_s30 + $0x8] sm:$0xff]  ;;  %v439_v16 = vld [vmem:[%s1291_s30] sm:$0xff]  ;;  %v438_v17 = vld [vmem:[%s1285_s18 + $0x38] sm:$0xff]  ;;  %p976_p8 = scmp.ne.s32.totalorder %s582_s8, %s975_s13  ;;  %s979_s15 = sshll.u32 %s1073_s14, 4  ;;  %s980_s15 = int_to_ptr.vmem [resolvable:$false] %s979_s15 }
  0x69   : > { %463 = vmatpush1.msra.mxu0 %v449_v6  ;;  %v437_v18 = vld [vmem:[%s1285_s18 + $0x30] sm:$0xff]  ;;  %v436_v19 = vld [vmem:[%s1285_s18 + $0x28] sm:$0xff]  ;;  %v435_v20 = vld [vmem:[%s1285_s18 + $0x20] sm:$0xff]  ;;  %v457_v34 = vstv %s456_s9  ;;  %v549_v51 = vsub.s32 %v546_v48, %v548_v49  ;;  %s981_s26 = scalar_lea.vmem %s980_s15, 64  ;;  %p982_p4 = scmp.lt.s32.totalorder %s582_s8, %s980_s15 }
  0x6a   : > { %464 = vmatprep.subr.mxu0 %v448_v7  ;;  %v434_v21 = vld [vmem:[%s1285_s18 + $0x18] sm:$0xff]  ;;  %v433_v22 = vld [vmem:[%s1285_s18 + $0x10] sm:$0xff]  ;;  %v432_v23 = vld [vmem:[%s1285_s18 + $0x8] sm:$0xff]  ;;  %p977_p0 = pnand %p976_p8, %p1167_p9  ;;  %p983_p7 = scmp.lt.s32.totalorder %s981_s26, %s975_s13 }
  0x6b   : > { %465 = vmatpush1.msra.mxu0 %v447_v8  ;;  %v431_v24 = vld [vmem:[%s1285_s18] sm:$0xff]  ;;  %v430_v25 = vld [vmem:[%s1278_s16 + $0x38] sm:$0xff]  ;;  %v429_v26 = vld [vmem:[%s1278_s16 + $0x30] sm:$0xff] }
  0x6c   : > { %466 = vmatprep.subr.mxu0 %v446_v9  ;;  %v428_v27 = vld [vmem:[%s1278_s16 + $0x28] sm:$0xff]  ;;  %v427_v28 = vld [vmem:[%s1278_s16 + $0x20] sm:$0xff]  ;;  %v426_v29 = vld [vmem:[%s1278_s16 + $0x18] sm:$0xff]  ;;  %p978_p3 = pneg %p977_p0  ;;  %p984_p10 = por %p983_p7, %p982_p4 }
  0x6d   : > { %467 = vmatpush1.msra.mxu0 %v445_v10  ;;  %v425_v30 = vld [vmem:[%s1278_s16 + $0x10] sm:$0xff]  ;;  %v424_v31 = vld [vmem:[%s1278_s16 + $0x8] sm:$0xff]  ;;  %v423_v32 = vld [vmem:[%s1278_s16] sm:$0xff] }
  0x6e   : > { %468 = vmatprep.subr.mxu0 %v444_v11  ;;  %v455_v33 = vld [vmem:[%s1366_s0] sm:$0x1]  ;;  %p985_p13 = pnand %p984_p10, %p978_p3 }
  0x6f   : > { %469 = vmatpush1.msra.mxu0 %v443_v12 }
  0x70   : > { %470 = vmatprep.subr.mxu0 %v442_v13 }
  0x71   : > { %471 = vmatpush1.msra.mxu0 %v441_v14 }
  0x72   : > { %472 = vmatprep.subr.mxu0 %v440_v15 }
  0x73   : > { %473 = vmatpush1.msra.mxu0 %v439_v16 }
  0x74   : > { %474 = vmatprep.subr.mxu0 %v438_v17 }
  0x75   : > { %475 = vmatpush1.msra.mxu0 %v437_v18 }
  0x76   : > { %476 = vmatprep.subr.mxu0 %v436_v19 }
  0x77   : > { %477 = vmatpush1.msra.mxu0 %v435_v20 }
  0x78   : > { %478 = vmatprep.subr.mxu0 %v434_v21 }
  0x79   : > { %479 = vmatpush1.msra.mxu0 %v433_v22 }
  0x7a   : > { %480 = vmatprep.subr.mxu0 %v432_v23 }
  0x7b   : > { %481 = vmatpush1.msra.mxu0 %v431_v24 }
  0x7c   : > { %482 = vmatprep.subr.mxu0 %v430_v25 }
  0x7d   : > { %483 = vmatpush1.msra.mxu0 %v429_v26 }
  0x7e   : > { %484 = vmatprep.subr.mxu0 %v428_v27 }
  0x7f   : > { %485 = vmatpush1.msra.mxu0 %v427_v28 }
  0x80   : > { %486 = vmatprep.subr.mxu0 %v426_v29 }
  0x81   : > { %487 = vmatpush1.msra.mxu0 %v425_v30 }
  0x82   : > { %488 = vmatprep.subr.mxu0 %v424_v31 }
  0x83   : > { %489 = vmatpush1.msra.mxu0 %v423_v32 }
  0x84   : > { %523 = vmatmul.mubr.f32.vlgmr.msra.gmra.mxu0 %v455_v33 }
 0x144   : > { %v524_v35 = vpop.f32.mrf.mxu0 }
 0x145   : > { %v525_v36 = vadd.f32 %v524_v35, %v457_v34 }
 0x146   : > { %v526_v37 = vpop.f32.mrf.mxu0 }
 0x147   : > { %v762_v38 = vmul.f32 -1.442695, %v525_v36  ;;  %v527_v39 = vadd.f32 %v526_v37, %v457_v34 }
 0x149   : > { %855 = vpow2.f32 %v762_v38  ;;  %v763_v40 = vmul.f32 -1.442695, %v527_v39 }
 0x14b   : > { %857 = vpow2.f32 %v763_v40 }
 0x156   : > { %v856_v41 = vpop.eup %855 }
 0x157   : > { %v535_v42 = vadd.f32 1.0, %v856_v41 }
 0x158   : > { %v858_v43 = vpop.eup %857 }
 0x159   : > { %v536_v44 = vadd.f32 1.0, %v858_v43  ;;  %859 = vrcp.f32 %v535_v42 }
 0x15b   : > { %861 = vrcp.f32 %v536_v44 }
 0x166   : > { %v860_v50 = vpop.eup %859 }
 0x168   : > { %v862_v52 = vpop.eup %861 }
 0x169   : > { %v543_v53 = vcombine.low %v860_v50, %v862_v52 }
 0x16b   : > { %v550_v54 = vrot.slane %v543_v53, %v549_v51 }
 0x16d   : > { %v557_v55 = vrot.slane %v550_v54, %v549_v51 }
 0x16f   : > { %563 = vst.msk [vmem:[%s417_s12] sm:$0x3] %vm561_vm0, %v557_v55 }
 0x170   : > { %988 = shalt.err (!%p985_p13)
}
 0x171   : > { %s989_s16 = scalar_lea.hbm %s579_s19, 32  ;;  %s993_s7 = scalar_lea.hbm %s1372_s6, 64 }
 0x172   : > { %p990_p12 = scmp.ne.s32.totalorder %s579_s19, %s989_s16  ;;  %p994_p5 = scmp.lt.s32.totalorder %s579_s19, %s1372_s6 }
 0x173   : > { %p995_p6 = scmp.lt.s32.totalorder %s993_s7, %s989_s16 }
 0x174   : > { %p991_p1 = pnand %p990_p12, %p1167_p9 }
 0x175   : > { %p996_p8 = por %p995_p6, %p994_p5 }
 0x176   : > { %p992_p2 = pneg %p991_p1 }
 0x178   : > { %p997_p0 = pnand %p996_p8, %p992_p2 }
 0x17a   : > { %1000 = shalt.err (!%p997_p0)
}
 0x17b   : > { %782 = dma.vmem_to_hbm [thread:$0]  (%p1167_p9), %s582_s8, 32, %s579_s19, %s565_s3  }
 0x17c PF: > { %s1395_s27 = sld [smem:[#allocation16_spill]]  ;;  %p1397_p3 = scmp.ge.s32.totalorder %s1063_s28, 2 }
 0x17e   : > { %p798_p4 = pnand %p1397_p3, %p1174_p11 }
 0x180   : > { %p799_p7 = pneg %p798_p4 }
 0x182   : > { %s593_s1 = sand.u32 1, %s1395_s27  }
 0x183   : > { %s594_s10 = scalar_lea.sflag [#allocation5], %s593_s1 }
 0x184   : > { %1038 = dma.done.wait (%p799_p7), %s594_s10, 32  }
 0x185   : > { %1040 = vsyncadd (%p799_p7), %s594_s10, 4294967264  ;;  %s29_s28 = sadd.s32 1, %s1063_s28   ;;  %s1398_s9 = sld [smem:[#allocation17_spill]] }
 0x186   : > { %p26_p10 = scmp.ge.s32.totalorder %s29_s28, 4   ;;  %s1399_s25 = sld [smem:[#allocation20_spill]] }
 0x187   : > { %s1400_s26 = sld [smem:[#allocation18_spill]]  ;;  %s1402_s23 = smov %s1047_s24 }
 0x188   : > { %s1401_s27 = sld [smem:[#allocation19_spill]]  ;;  %28 = sbr.rel (!%p26_p10) target bundleno = 13 (0xd), region = 126 }
 0x18b   : > { %s1403_s24 = smov %s1398_s9 }
 0x18d   :  { %599 = vsyncpa [#allocation4], 1 }
 0x18e   :  { %601 = vsyncpa [#allocation4 + $0x1], 1 }
 0x18f   :  { %602 = vsyncpa [#allocation7], 1 }
 0x190   :  { %604 = vsyncpa [#allocation7 + $0x1], 1 }
 0x191   :  { %605 = vsyncpa [#allocation10], 1 }
 0x192   :  { %607 = vsyncpa [#allocation10 + $0x1], 1 }
 0x193   :  { %608 = vsyncpa [#allocation5], 1 }
 0x194   :  { %610 = vsyncpa [#allocation5 + $0x1], 1 }

</bundles_post_ra>
